<compile_context>
chip_gen: v7x
topology: tpu7x:2x2x1
jax: 0.10.0
libtpu: 0.0.40
codegen_flags: <defaults>
</compile_context>

<pallas_src>
import functools

import jax
import jax.numpy as jnp
from jax.experimental import pallas as pl
from jax.experimental.pallas import tpu as pltpu

NUM_FTR = 300
LAYER_DIMS = [5, 16, 32, 64, 128, NUM_FTR]
MAX_TILE_B = 2048        # safe on v5e/v6e/v7x with the explicit vmem limit below
LANE = 128


def _round_up(n, m):
    return ((n + m - 1) // m) * m


def _sigmoid(h):
    # Mathematically identical to 1/(1+exp(-x)); single EUP push (tanh).
    return 0.5 * jnp.tanh(0.5 * h) + 0.5


def _mlp_kernel(x_ref,
                w1_ref, b1_ref,
                w2_ref, b2_ref,
                w3_ref, b3_ref,
                w4_ref, b4_ref,
                w5_ref, b5_ref,
                o_ref,
                *, matmul_dtype):
    """Fused 5-layer MLP with sigmoid activations (not on the final layer)."""

    def dense(h, w_ref, b_ref):
        lhs = h.astype(matmul_dtype)
        rhs = w_ref[...].astype(matmul_dtype)
        return jnp.dot(lhs, rhs, preferred_element_type=jnp.float32) + b_ref[...]

    h = x_ref[...]
    h = _sigmoid(dense(h, w1_ref, b1_ref))
    h = _sigmoid(dense(h, w2_ref, b2_ref))
    h = _sigmoid(dense(h, w3_ref, b3_ref))
    h = _sigmoid(dense(h, w4_ref, b4_ref))
    h = dense(h, w5_ref, b5_ref)
    o_ref[...] = h.astype(o_ref.dtype)


def init_params(key):
    """Init mirroring PyTorch nn.Linear default (uniform +/- 1/sqrt(fan_in)).

    Weights returned as (in_features, out_features); biases as (1, out_features).
    """
    params = []
    for i in range(len(LAYER_DIMS) - 1):
        fan_in, fan_out = LAYER_DIMS[i], LAYER_DIMS[i + 1]
        key, kw, kb = jax.random.split(key, 3)
        bound = 1.0 / jnp.sqrt(float(fan_in))
        w = jax.random.uniform(kw, (fan_in, fan_out), jnp.float32, -bound, bound)
        b = jax.random.uniform(kb, (1, fan_out), jnp.float32, -bound, bound)
        params.append((w, b))
    return params


def _padded_bytes(rows, cols, itemsize=4):
    """VMEM footprint of a 2-D f32 buffer after (8,128) tile padding."""
    return _round_up(max(rows, 8), 8) * _round_up(cols, LANE) * itemsize


def _estimate_vmem_bytes(tile_b, flat_params):
    total = 2 * _padded_bytes(tile_b, LAYER_DIMS[0])     # input (double buffered)
    total += 2 * _padded_bytes(tile_b, NUM_FTR)          # output (double buffered)
    for p in flat_params:                                # resident params (x2 bufs)
        total += 2 * _padded_bytes(p.shape[0], p.shape[-1])
    for d in LAYER_DIMS[1:]:                             # live activations
        total += _padded_bytes(tile_b, d)
    return total


def nn_regressor_mises_lnv(x, params, tile_b=None,
                           use_bf16_matmul=False, out_dtype=jnp.float32):
    """Forward pass of NNRegressor_MisesLnV as a batch-tiled fused Pallas kernel.

    x: (B, 5) float32 -> returns (B, 300) in `out_dtype` (default float32).

    use_bf16_matmul=True casts matmul operands to bf16 (f32 accumulate) - a
    v5e MXU optimization that trades exact f32 parity.  out_dtype=bfloat16
    halves the dominant HBM write stream, also trading numerics.
    """
    B = x.shape[0]

    # --- tile selection ------------------------------------------------------
    if tile_b is None:
        b_min = _round_up(max(B, 8), 8)
        if b_min >= 16:
            # Guarantee >= 2 grid steps so both TensorCores on v7x get work.
            tile_b = min(MAX_TILE_B, _round_up(pl.cdiv(b_min, 2), 8))
        else:
            tile_b = b_min
    tile_b = max(8, _round_up(int(tile_b), 8))

    b_pad = _round_up(max(B, tile_b), tile_b)
    if b_pad != B:
        x = jnp.pad(x, ((0, b_pad - B), (0, 0)))

    # --- params (kept at their natural shapes; no lane padding needed) -------
    flat_params = []
    for (w, b) in params:
        flat_params.extend([w.astype(jnp.float32), b.astype(jnp.float32)])

    grid = (b_pad // tile_b,)

    x_spec = pl.BlockSpec((tile_b, LAYER_DIMS[0]), lambda i: (i, 0))
    # Weights/biases: full-array blocks with a constant index_map -> DMA'd once,
    # resident in VMEM across all grid steps.
    param_specs = [pl.BlockSpec(p.shape, lambda i: (0, 0)) for p in flat_params]
    # Unpadded output: last block dim == full array dim (300), so this is legal;
    # only the final 44-of-128 lane group uses a masked store.
    out_spec = pl.BlockSpec((tile_b, NUM_FTR), lambda i: (i, 0))

    # Advisory cost estimate for XLA scheduling around the custom call.
    flops = 2 * b_pad * sum(LAYER_DIMS[i] * LAYER_DIMS[i + 1] for i in range(5))
    transcendentals = b_pad * sum(LAYER_DIMS[1:5])          # one tanh per sigmoid
    weight_bytes = sum(int(p.size) * 4 for p in flat_params)
    out_itemsize = jnp.dtype(out_dtype).itemsize
    bytes_accessed = (b_pad * LAYER_DIMS[0] * 4
                      + b_pad * NUM_FTR * out_itemsize
                      + weight_bytes)

    # Explicit scoped-VMEM limit sized from the actual buffers (+25% headroom),
    # floored at 32 MiB (needed on v5e whose default is 16 MiB) and capped at
    # 48 MiB so it stays inside v7x's 64 MiB per-TensorCore physical VMEM.
    est = _estimate_vmem_bytes(tile_b, flat_params)
    vmem_limit = min(max(32 << 20, int(est * 1.25) + (2 << 20)), 48 << 20)

    kernel = functools.partial(
        _mlp_kernel,
        matmul_dtype=jnp.bfloat16 if use_bf16_matmul else jnp.float32)

    out = pl.pallas_call(
        kernel,
        out_shape=jax.ShapeDtypeStruct((b_pad, NUM_FTR), out_dtype),
        grid=grid,
        in_specs=[x_spec] + param_specs,
        out_specs=out_spec,
        compiler_params=pltpu.CompilerParams(
            dimension_semantics=("parallel",),
            vmem_limit_bytes=vmem_limit),
        cost_estimate=pl.CostEstimate(
            flops=flops,
            transcendentals=transcendentals,
            bytes_accessed=bytes_accessed),
    )(x, *flat_params)

    # Only the padded batch rows (if any) are discarded; no column slice and no
    # extra HBM pass when B is already tile-aligned.
    if b_pad != B:
        out = out[:B]
    return out


def _reference_forward(x, params):
    h = x
    for i, (w, b) in enumerate(params):
        h = h @ w + b
        if i < len(params) - 1:
            h = jax.nn.sigmoid(h)
    return h


if __name__ == "__main__":
    key = jax.random.PRNGKey(0)
    key, kx1, kx2, kx3 = jax.random.split(key, 4)
    params = init_params(key)

    # Test 1: tiny batch, single tile.
    B1 = 8
    x1 = jax.random.normal(kx1, (B1, 5), dtype=jnp.float32)
    out1 = jax.block_until_ready(nn_regressor_mises_lnv(x1, params))
    ref1 = _reference_forward(x1, params)
    assert out1.shape == (B1, NUM_FTR)
    assert jnp.allclose(out1, ref1, atol=1e-4, rtol=1e-4)

    # Test 2: batch not divisible by an explicit tile -> exercises padded tail.
    B2 = 37
    x2 = jax.random.normal(kx2, (B2, 5), dtype=jnp.float32)
    out2 = jax.block_until_ready(nn_regressor_mises_lnv(x2, params, tile_b=16))
    ref2 = _reference_forward(x2, params)
    assert out2.shape == (B2, NUM_FTR)
    assert jnp.allclose(out2, ref2, atol=1e-4, rtol=1e-4)

    # Test 3: default tile selection -> >= 2 grid steps (both TCs on v7x).
    B3 = 20
    x3 = jax.random.normal(kx3, (B3, 5), dtype=jnp.float32)
    out3 = jax.block_until_ready(nn_regressor_mises_lnv(x3, params))
    ref3 = _reference_forward(x3, params)
    assert out3.shape == (B3, NUM_FTR)
    assert jnp.allclose(out3, ref3, atol=1e-4, rtol=1e-4)

    print("KERNEL_OK")
</pallas_src>

<mosaic_0001>
module attributes {stable_mosaic.version = 11 : i64} {
  func.func @_mlp_kernel(%arg0: i32, %arg1: memref<8x5xf32, #tpu.memory_space<vmem>>, %arg2: memref<5x16xf32, #tpu.memory_space<vmem>>, %arg3: memref<1x16xf32, #tpu.memory_space<vmem>>, %arg4: memref<16x32xf32, #tpu.memory_space<vmem>>, %arg5: memref<1x32xf32, #tpu.memory_space<vmem>>, %arg6: memref<32x64xf32, #tpu.memory_space<vmem>>, %arg7: memref<1x64xf32, #tpu.memory_space<vmem>>, %arg8: memref<64x128xf32, #tpu.memory_space<vmem>>, %arg9: memref<1x128xf32, #tpu.memory_space<vmem>>, %arg10: memref<128x300xf32, #tpu.memory_space<vmem>>, %arg11: memref<1x300xf32, #tpu.memory_space<vmem>>, %arg12: memref<8x300xf32, #tpu.memory_space<vmem>>) attributes {dimension_semantics = [#tpu.dimension_semantics<parallel>], iteration_bounds = array<i64: 1>, scalar_prefetch = 0 : i64, scratch_operands = 0 : i64, tpu.core_type = #tpu.core_type<tc>, window_params = [{transform_indices = @transform_0, window_bounds = array<i64: 8, 5>}, {pipeline_mode = #tpu.pipeline_mode<synchronous>, transform_indices = @transform_1, window_bounds = array<i64: 5, 16>}, {pipeline_mode = #tpu.pipeline_mode<synchronous>, transform_indices = @transform_2, window_bounds = array<i64: 1, 16>}, {pipeline_mode = #tpu.pipeline_mode<synchronous>, transform_indices = @transform_3, window_bounds = array<i64: 16, 32>}, {pipeline_mode = #tpu.pipeline_mode<synchronous>, transform_indices = @transform_4, window_bounds = array<i64: 1, 32>}, {pipeline_mode = #tpu.pipeline_mode<synchronous>, transform_indices = @transform_5, window_bounds = array<i64: 32, 64>}, {pipeline_mode = #tpu.pipeline_mode<synchronous>, transform_indices = @transform_6, window_bounds = array<i64: 1, 64>}, {pipeline_mode = #tpu.pipeline_mode<synchronous>, transform_indices = @transform_7, window_bounds = array<i64: 64, 128>}, {pipeline_mode = #tpu.pipeline_mode<synchronous>, transform_indices = @transform_8, window_bounds = array<i64: 1, 128>}, {pipeline_mode = #tpu.pipeline_mode<synchronous>, transform_indices = @transform_9, window_bounds = array<i64: 128, 300>}, {pipeline_mode = #tpu.pipeline_mode<synchronous>, transform_indices = @transform_10, window_bounds = array<i64: 1, 300>}, {transform_indices = @transform_11, window_bounds = array<i64: 8, 300>}]} {
    %c0 = arith.constant 0 : index
    %c0_0 = arith.constant 0 : index
    %0 = vector.load %arg1[%c0, %c0_0] : memref<8x5xf32, #tpu.memory_space<vmem>>, vector<8x5xf32>
    %c0_1 = arith.constant 0 : index
    %c0_2 = arith.constant 0 : index
    %1 = vector.load %arg2[%c0_1, %c0_2] : memref<5x16xf32, #tpu.memory_space<vmem>>, vector<5x16xf32>
    %cst = arith.constant dense<0.000000e+00> : vector<8x16xf32>
    %2 = tpu.matmul %0, %1, %cst {dimension_numbers = #tpu.dot_dimension_numbers<[1], [0], [0], [1], [0, 0, 1, 1], [], []>} : vector<8x5xf32>, vector<5x16xf32>, vector<8x16xf32> -> vector<8x16xf32>
    %c0_3 = arith.constant 0 : index
    %c0_4 = arith.constant 0 : index
    %3 = vector.load %arg3[%c0_3, %c0_4] : memref<1x16xf32, #tpu.memory_space<vmem>>, vector<1x16xf32>
    %4 = vector.broadcast %3 : vector<1x16xf32> to vector<8x16xf32>
    %5 = arith.addf %2, %4 : vector<8x16xf32>
    %cst_5 = arith.constant 5.000000e-01 : f32
    %6 = vector.broadcast %cst_5 : f32 to vector<8x16xf32>
    %7 = arith.mulf %6, %5 : vector<8x16xf32>
    %8 = math.tanh %7 : vector<8x16xf32>
    %cst_6 = arith.constant 5.000000e-01 : f32
    %9 = vector.broadcast %cst_6 : f32 to vector<8x16xf32>
    %10 = arith.mulf %9, %8 : vector<8x16xf32>
    %cst_7 = arith.constant 5.000000e-01 : f32
    %11 = vector.broadcast %cst_7 : f32 to vector<8x16xf32>
    %12 = arith.addf %10, %11 : vector<8x16xf32>
    %c0_8 = arith.constant 0 : index
    %c0_9 = arith.constant 0 : index
    %13 = vector.load %arg4[%c0_8, %c0_9] : memref<16x32xf32, #tpu.memory_space<vmem>>, vector<16x32xf32>
    %cst_10 = arith.constant dense<0.000000e+00> : vector<8x32xf32>
    %14 = tpu.matmul %12, %13, %cst_10 {dimension_numbers = #tpu.dot_dimension_numbers<[1], [0], [0], [1], [0, 0, 1, 1], [], []>} : vector<8x16xf32>, vector<16x32xf32>, vector<8x32xf32> -> vector<8x32xf32>
    %c0_11 = arith.constant 0 : index
    %c0_12 = arith.constant 0 : index
    %15 = vector.load %arg5[%c0_11, %c0_12] : memref<1x32xf32, #tpu.memory_space<vmem>>, vector<1x32xf32>
    %16 = vector.broadcast %15 : vector<1x32xf32> to vector<8x32xf32>
    %17 = arith.addf %14, %16 : vector<8x32xf32>
    %cst_13 = arith.constant 5.000000e-01 : f32
    %18 = vector.broadcast %cst_13 : f32 to vector<8x32xf32>
    %19 = arith.mulf %18, %17 : vector<8x32xf32>
    %20 = math.tanh %19 : vector<8x32xf32>
    %cst_14 = arith.constant 5.000000e-01 : f32
    %21 = vector.broadcast %cst_14 : f32 to vector<8x32xf32>
    %22 = arith.mulf %21, %20 : vector<8x32xf32>
    %cst_15 = arith.constant 5.000000e-01 : f32
    %23 = vector.broadcast %cst_15 : f32 to vector<8x32xf32>
    %24 = arith.addf %22, %23 : vector<8x32xf32>
    %c0_16 = arith.constant 0 : index
    %c0_17 = arith.constant 0 : index
    %25 = vector.load %arg6[%c0_16, %c0_17] : memref<32x64xf32, #tpu.memory_space<vmem>>, vector<32x64xf32>
    %cst_18 = arith.constant dense<0.000000e+00> : vector<8x64xf32>
    %26 = tpu.matmul %24, %25, %cst_18 {dimension_numbers = #tpu.dot_dimension_numbers<[1], [0], [0], [1], [0, 0, 1, 1], [], []>} : vector<8x32xf32>, vector<32x64xf32>, vector<8x64xf32> -> vector<8x64xf32>
    %c0_19 = arith.constant 0 : index
    %c0_20 = arith.constant 0 : index
    %27 = vector.load %arg7[%c0_19, %c0_20] : memref<1x64xf32, #tpu.memory_space<vmem>>, vector<1x64xf32>
    %28 = vector.broadcast %27 : vector<1x64xf32> to vector<8x64xf32>
    %29 = arith.addf %26, %28 : vector<8x64xf32>
    %cst_21 = arith.constant 5.000000e-01 : f32
    %30 = vector.broadcast %cst_21 : f32 to vector<8x64xf32>
    %31 = arith.mulf %30, %29 : vector<8x64xf32>
    %32 = math.tanh %31 : vector<8x64xf32>
    %cst_22 = arith.constant 5.000000e-01 : f32
    %33 = vector.broadcast %cst_22 : f32 to vector<8x64xf32>
    %34 = arith.mulf %33, %32 : vector<8x64xf32>
    %cst_23 = arith.constant 5.000000e-01 : f32
    %35 = vector.broadcast %cst_23 : f32 to vector<8x64xf32>
    %36 = arith.addf %34, %35 : vector<8x64xf32>
    %c0_24 = arith.constant 0 : index
    %c0_25 = arith.constant 0 : index
    %37 = vector.load %arg8[%c0_24, %c0_25] : memref<64x128xf32, #tpu.memory_space<vmem>>, vector<64x128xf32>
    %cst_26 = arith.constant dense<0.000000e+00> : vector<8x128xf32>
    %38 = tpu.matmul %36, %37, %cst_26 {dimension_numbers = #tpu.dot_dimension_numbers<[1], [0], [0], [1], [0, 0, 1, 1], [], []>} : vector<8x64xf32>, vector<64x128xf32>, vector<8x128xf32> -> vector<8x128xf32>
    %c0_27 = arith.constant 0 : index
    %c0_28 = arith.constant 0 : index
    %39 = vector.load %arg9[%c0_27, %c0_28] : memref<1x128xf32, #tpu.memory_space<vmem>>, vector<1x128xf32>
    %40 = vector.broadcast %39 : vector<1x128xf32> to vector<8x128xf32>
    %41 = arith.addf %38, %40 : vector<8x128xf32>
    %cst_29 = arith.constant 5.000000e-01 : f32
    %42 = vector.broadcast %cst_29 : f32 to vector<8x128xf32>
    %43 = arith.mulf %42, %41 : vector<8x128xf32>
    %44 = math.tanh %43 : vector<8x128xf32>
    %cst_30 = arith.constant 5.000000e-01 : f32
    %45 = vector.broadcast %cst_30 : f32 to vector<8x128xf32>
    %46 = arith.mulf %45, %44 : vector<8x128xf32>
    %cst_31 = arith.constant 5.000000e-01 : f32
    %47 = vector.broadcast %cst_31 : f32 to vector<8x128xf32>
    %48 = arith.addf %46, %47 : vector<8x128xf32>
    %c0_32 = arith.constant 0 : index
    %c0_33 = arith.constant 0 : index
    %49 = vector.load %arg10[%c0_32, %c0_33] : memref<128x300xf32, #tpu.memory_space<vmem>>, vector<128x300xf32>
    %cst_34 = arith.constant dense<0.000000e+00> : vector<8x300xf32>
    %50 = tpu.matmul %48, %49, %cst_34 {dimension_numbers = #tpu.dot_dimension_numbers<[1], [0], [0], [1], [0, 0, 1, 1], [], []>} : vector<8x128xf32>, vector<128x300xf32>, vector<8x300xf32> -> vector<8x300xf32>
    %c0_35 = arith.constant 0 : index
    %c0_36 = arith.constant 0 : index
    %51 = vector.load %arg11[%c0_35, %c0_36] : memref<1x300xf32, #tpu.memory_space<vmem>>, vector<1x300xf32>
    %52 = vector.broadcast %51 : vector<1x300xf32> to vector<8x300xf32>
    %53 = arith.addf %50, %52 : vector<8x300xf32>
    %c0_37 = arith.constant 0 : index
    %c0_38 = arith.constant 0 : index
    %54 = vector.load %arg12[%c0_37, %c0_38] : memref<8x300xf32, #tpu.memory_space<vmem>>, vector<8x300xf32>
    tpu.vector_store %arg12[%c0_37, %c0_38], %53 {strides = array<i32>} : memref<8x300xf32, #tpu.memory_space<vmem>>, vector<8x300xf32>,
    return
  }
  func.func @transform_0(%arg0: i32) -> (i32, i32) {
    %c0_i32 = arith.constant 0 : i32
    %c0_i32_0 = arith.constant 0 : i32
    return %arg0, %c0_i32 : i32, i32
  }
  func.func @transform_1(%arg0: i32) -> (i32, i32) {
    %c0_i32 = arith.constant 0 : i32
    %c0_i32_0 = arith.constant 0 : i32
    %c0_i32_1 = arith.constant 0 : i32
    return %c0_i32, %c0_i32_0 : i32, i32
  }
  func.func @transform_2(%arg0: i32) -> (i32, i32) {
    %c0_i32 = arith.constant 0 : i32
    %c0_i32_0 = arith.constant 0 : i32
    %c0_i32_1 = arith.constant 0 : i32
    return %c0_i32, %c0_i32_0 : i32, i32
  }
  func.func @transform_3(%arg0: i32) -> (i32, i32) {
    %c0_i32 = arith.constant 0 : i32
    %c0_i32_0 = arith.constant 0 : i32
    %c0_i32_1 = arith.constant 0 : i32
    return %c0_i32, %c0_i32_0 : i32, i32
  }
  func.func @transform_4(%arg0: i32) -> (i32, i32) {
    %c0_i32 = arith.constant 0 : i32
    %c0_i32_0 = arith.constant 0 : i32
    %c0_i32_1 = arith.constant 0 : i32
    return %c0_i32, %c0_i32_0 : i32, i32
  }
  func.func @transform_5(%arg0: i32) -> (i32, i32) {
    %c0_i32 = arith.constant 0 : i32
    %c0_i32_0 = arith.constant 0 : i32
    %c0_i32_1 = arith.constant 0 : i32
    return %c0_i32, %c0_i32_0 : i32, i32
  }
  func.func @transform_6(%arg0: i32) -> (i32, i32) {
    %c0_i32 = arith.constant 0 : i32
    %c0_i32_0 = arith.constant 0 : i32
    %c0_i32_1 = arith.constant 0 : i32
    return %c0_i32, %c0_i32_0 : i32, i32
  }
  func.func @transform_7(%arg0: i32) -> (i32, i32) {
    %c0_i32 = arith.constant 0 : i32
    %c0_i32_0 = arith.constant 0 : i32
    %c0_i32_1 = arith.constant 0 : i32
    return %c0_i32, %c0_i32_0 : i32, i32
  }
  func.func @transform_8(%arg0: i32) -> (i32, i32) {
    %c0_i32 = arith.constant 0 : i32
    %c0_i32_0 = arith.constant 0 : i32
    %c0_i32_1 = arith.constant 0 : i32
    return %c0_i32, %c0_i32_0 : i32, i32
  }
  func.func @transform_9(%arg0: i32) -> (i32, i32) {
    %c0_i32 = arith.constant 0 : i32
    %c0_i32_0 = arith.constant 0 : i32
    %c0_i32_1 = arith.constant 0 : i32
    return %c0_i32, %c0_i32_0 : i32, i32
  }
  func.func @transform_10(%arg0: i32) -> (i32, i32) {
    %c0_i32 = arith.constant 0 : i32
    %c0_i32_0 = arith.constant 0 : i32
    %c0_i32_1 = arith.constant 0 : i32
    return %c0_i32, %c0_i32_0 : i32, i32
  }
  func.func @transform_11(%arg0: i32) -> (i32, i32) {
    %c0_i32 = arith.constant 0 : i32
    %c0_i32_0 = arith.constant 0 : i32
    return %arg0, %c0_i32 : i32, i32
  }
}

</mosaic_0001>

<bundles_post_ra>
// kernel: tpu_custom_call.1
= control target key start
LH: loop header
LB: loop body
LE: loop exit
PB: predicated region body
PF: predicated region fallthrough
CT: control target
= control target key end

     0   :  { %vm52_vm0 = vcmask 1044480   ;;  %v858_v2 = vmov 0.0   ;;  %vm859_vm1 = vmmov 0   ;;  %vm48_vm2 = vcmask 39936   ;;  %s1168_s0 = inlined_call_operand.vmem [shape: f32[8,5], index: 0, kind: input, shape index: {}]   ;;  %s1169_s1 = inlined_call_operand.vmem [shape: f32[5,16], index: 1, kind: input, shape index: {}]   ;;  %s1170_s2 = inlined_call_operand.vmem [shape: f32[1,16], index: 2, kind: input, shape index: {}]   ;;  %s1171_s3 = inlined_call_operand.vmem [shape: f32[16,32], index: 3, kind: input, shape index: {}]   ;;  %s1172_s4 = inlined_call_operand.vmem [shape: f32[1,32], index: 4, kind: input, shape index: {}]   ;;  %s1173_s5 = inlined_call_operand.vmem [shape: f32[32,64], index: 5, kind: input, shape index: {}]   ;;  %s1174_s6 = inlined_call_operand.vmem [shape: f32[1,64], index: 6, kind: input, shape index: {}]   ;;  %s1175_s7 = inlined_call_operand.vmem [shape: f32[64,128], index: 7, kind: input, shape index: {}]   ;;  %s1176_s8 = inlined_call_operand.vmem [shape: f32[1,128], index: 8, kind: input, shape index: {}]   ;;  %s1177_s9 = inlined_call_operand.vmem [shape: f32[128,300], index: 9, kind: input, shape index: {}]   ;;  %s1178_s10 = inlined_call_operand.vmem [shape: f32[1,300], index: 10, kind: input, shape index: {}]   ;;  %s1179_s11 = inlined_call_operand.hbm [shape: f32[8,300], index: 11, kind: output, shape index: {}]  }
   0x1   :  { %v40_v0 = vld [vmem:[%s1169_s1] sm:$0x1f]  ;;  %668 = vmatprep.subr.mxu0 %v858_v2  ;;  %670 = vmatprep.mubr.msk.f32.mxu0 %vm859_vm1, %v858_v2 }
   0x2   :  { %v39_v1 = vld [vmem:[%s1168_s0] sm:$0xff] }
   0x3   :  { %16 = vsyncpa [#allocation3], 0  ;;  %669 = vmatpush3.msk.msra.mxu0 %vm52_vm0, %v40_v0  ;;  %707 = vmatprep.mubr.msk.f32.mxu1 %vm859_vm1, %v858_v2  ;;  %v130_v3 = vld [vmem:[%s1171_s3] sm:$0xff]  ;;  %v131_v4 = vld [vmem:[%s1171_s3 + $0x8] sm:$0xff]  ;;  %v860_v6 = vmov 0.0|0.0   ;;  %vm139_vm3 = vcmask 130048  }
   0x4   :  { %671 = vmatmul.mubr.msk.f32.vlgmr.msra.gmra.mrb[0].mxu0 %vm48_vm2, %v39_v1  ;;  %v746_v5 = vpack.c.bf16 %v131_v4, %v130_v3  ;;  %745 = vmatprep.subr.bf16.mxu0 %v860_v6  ;;  %v623_v7 = vld [vmem:[%s1170_s2] ss:$0 sm:$0xff]  ;;  %v218_v16 = vld [vmem:[%s1173_s5 + $0x8] sm:$0xff]  ;;  %v219_v18 = vld [vmem:[%s1173_s5 + $0x10] sm:$0xff]  ;;  %vm228_vm4 = vcmask 261120   ;;  %vm321_vm5 = vcmask 523264  }
   0x5   :  { %677 = vmatprep.mubr.msk.f32.mxu0 %vm859_vm1, %v858_v2  ;;  %754 = vmatprep.subr.bf16.mxu1 %v860_v6  ;;  %v217_v15 = vld [vmem:[%s1173_s5] sm:$0xff]  ;;  %v220_v19 = vld [vmem:[%s1173_s5 + $0x18] sm:$0xff]  ;;  %v307_v30 = vld [vmem:[%s1175_s7 + $0x8] sm:$0xff]  ;;  %vm607_vm6 = vcmask 359424  }
   0x6   :  { %747 = vmatpush3.bf16.msra.mxu0 %v746_v5  ;;  %v749_v17 = vpack.c.bf16 %v218_v16, %v217_v15  ;;  %v752_v20 = vpack.c.bf16 %v220_v19, %v219_v18  ;;  %v626_v21 = vld [vmem:[%s1172_s4] ss:$0 sm:$0xff]  ;;  %v308_v32 = vld [vmem:[%s1175_s7 + $0x10] sm:$0xff]  ;;  %v309_v33 = vld [vmem:[%s1175_s7 + $0x18] sm:$0xff] }
   0x7   :  { %748 = vmatprep.subr.bf16.mxu0 %v860_v6  ;;  %v306_v29 = vld [vmem:[%s1175_s7] sm:$0xff]  ;;  %v758_v34 = vpack.c.bf16 %v309_v33, %v308_v32  ;;  %v311_v36 = vld [vmem:[%s1175_s7 + $0x28] sm:$0xff]  ;;  %v312_v38 = vld [vmem:[%s1175_s7 + $0x30] sm:$0xff] }
   0x8   :  { %v755_v31 = vpack.c.bf16 %v307_v30, %v306_v29  ;;  %v310_v35 = vld [vmem:[%s1175_s7 + $0x20] sm:$0xff]  ;;  %v313_v39 = vld [vmem:[%s1175_s7 + $0x38] sm:$0xff]  ;;  %v400_v41 = vld [vmem:[%s1177_s9 + $0x8] sm:$0xff] }
   0x9   :  { %v761_v37 = vpack.c.bf16 %v311_v36, %v310_v35  ;;  %v764_v40 = vpack.c.bf16 %v313_v39, %v312_v38  ;;  %v403_v42 = vld [vmem:[%s1177_s9 + $0x20] sm:$0xff]  ;;  %v402_v45 = vld [vmem:[%s1177_s9 + $0x18] sm:$0xff]  ;;  %v409_v48 = vld [vmem:[%s1177_s9 + $0x50] sm:$0xff] }
   0xa   :  { %756 = vmatpush3.bf16.msra.mxu1 %v755_v31  ;;  %v399_v43 = vld [vmem:[%s1177_s9] sm:$0xff]  ;;  %v766_v44 = vpack.c.bf16 %v403_v42, %v400_v41  ;;  %v406_v47 = vld [vmem:[%s1177_s9 + $0x38] sm:$0xff]  ;;  %v405_v49 = vld [vmem:[%s1177_s9 + $0x30] sm:$0xff] }
   0xb   :  { %757 = vmatprep.subr.bf16.mxu1 %v860_v6  ;;  %v768_v46 = vpack.c.bf16 %v402_v45, %v399_v43  ;;  %v770_v50 = vpack.c.bf16 %v409_v48, %v406_v47  ;;  %v408_v51 = vld [vmem:[%s1177_s9 + $0x48] sm:$0xff]  ;;  %v415_v54 = vld [vmem:[%s1177_s9 + $0x80] sm:$0xff]  ;;  %v414_v57 = vld [vmem:[%s1177_s9 + $0x78] sm:$0xff] }
   0xc   :  { %v772_v52 = vpack.c.bf16 %v408_v51, %v405_v49  ;;  %v412_v53 = vld [vmem:[%s1177_s9 + $0x68] sm:$0xff]  ;;  %v411_v56 = vld [vmem:[%s1177_s9 + $0x60] sm:$0xff]  ;;  %v401_v0 = vld [vmem:[%s1177_s9 + $0x10] sm:$0xff] }
   0xd   :  { %v774_v55 = vpack.c.bf16 %v415_v54, %v412_v53  ;;  %v776_v58 = vpack.c.bf16 %v414_v57, %v411_v56  ;;  %v628_v59 = vld [vmem:[%s1174_s6] ss:$0 sm:$0xff]  ;;  %v404_v1 = vld [vmem:[%s1177_s9 + $0x28] sm:$0xff]  ;;  %v417_v16 = vld [vmem:[%s1177_s9 + $0x90] sm:$0xff] }
   0xe   :  { %759 = vmatpush3.bf16.msra.mxu1 %v758_v34  ;;  %v799_v5 = vpack.c.bf16 %v404_v1, %v401_v0  ;;  %v419_v18 = vld [vmem:[%s1177_s9 + $0xa0] sm:$0xff]  ;;  %v428_v29 = vld [vmem:[%s1177_s9 + $0xe8] sm:$0xff]  ;;  %v430_v31 = vld [vmem:[%s1177_s9 + $0xf8] sm:$0xff]  ;;  %v449_v1 = vlaneseq }
   0xf   :  { %760 = vmatprep.subr.bf16.mxu1 %v860_v6  ;;  %v433_v32 = vld [vmem:[%s1177_s9 + $0x110] sm:$0xff]  ;;  %v432_v35 = vld [vmem:[%s1177_s9 + $0x108] sm:$0xff]  ;;  %v431_v36 = vld [vmem:[%s1177_s9 + $0x100] sm:$0xff] }
  0x10   :  { %v786_v33 = vpack.c.bf16 %v433_v32, %v430_v31  ;;  %v429_v34 = vld [vmem:[%s1177_s9 + $0xf0] sm:$0xff]  ;;  %v434_v38 = vld [vmem:[%s1177_s9 + $0x118] sm:$0xff]  ;;  %v439_v41 = vld [vmem:[%s1177_s9 + $0x140] sm:$0xff] }
  0x11   :  { %v814_v39 = vpack.c.bf16 %v434_v38, %v431_v36  ;;  %v435_v43 = vld [vmem:[%s1177_s9 + $0x120] sm:$0xff]  ;;  %v437_v45 = vld [vmem:[%s1177_s9 + $0x130] sm:$0xff]  ;;  %v440_v47 = vld [vmem:[%s1177_s9 + $0x148] sm:$0xff] }
  0x12   :  { %762 = vmatpush3.bf16.msra.mxu1 %v761_v37  ;;  %v788_v37 = vpack.c.bf16 %v432_v35, %v429_v34  ;;  %v817_v48 = vpack.c.bf16 %v440_v47, %v437_v45  ;;  %v442_v49 = vld [vmem:[%s1177_s9 + $0x158] sm:$0xff]  ;;  %v444_v53 = vld [vmem:[%s1177_s9 + $0x168] sm:$0xff]  ;;  %v443_v54 = vld [vmem:[%s1177_s9 + $0x160] sm:$0xff] }
  0x13   :  { %763 = vmatprep.subr.bf16.mxu1 %v860_v6  ;;  %v446_v56 = vld [vmem:[%s1177_s9 + $0x178] sm:$0xff] }
  0x14   :  { %v820_v57 = vpack.c.bf16 %v446_v56, %v443_v54 }
  0x16   :  { %765 = vmatpush3.bf16.msra.mxu1 %v764_v40  ;;  %v436_v40 = vld [vmem:[%s1177_s9 + $0x128] sm:$0xff] }
  0x17   :  { %798 = vmatprep.subr.bf16.mxu1 %v860_v6  ;;  %v790_v42 = vpack.c.bf16 %v439_v41, %v436_v40 }
  0xd7   :  { %v122_v8 = vpop.f32.mrb[0].mxu0 }
  0xd8   :  { %v123_v9 = vadd.f32 %v623_v7, %v122_v8  ;;  %v672_v10 = vpop.f32.mrb[1].mxu0  ;;  %v407_v8 = vld [vmem:[%s1177_s9 + $0x40] sm:$0xff] }
  0xda   :  { %v126_v11 = vmul.f32 0.5, %v123_v9  ;;  %v410_v9 = vld [vmem:[%s1177_s9 + $0x58] sm:$0xff] }
  0xdb   :  { %v802_v10 = vpack.c.bf16 %v410_v9, %v407_v8 }
  0xdc   :  { %826 = vtanh.f32 %v126_v11  ;;  %v413_v11 = vld [vmem:[%s1177_s9 + $0x70] sm:$0xff] }
  0xe6   :  { %v827_v12 = vpop.eup %826 }
  0xe7   :  { %v128_v13 = vmul.f32 0.5, %v827_v12  ;;  %v416_v12 = vld [vmem:[%s1177_s9 + $0x88] sm:$0xff] }
  0xe9   :  { %v129_v14 = vadd.f32 0.5, %v128_v13  ;;  %v805_v13 = vpack.c.bf16 %v416_v12, %v413_v11 }
  0xeb   :  { %678 = vmatmul.mubr.msk.f32.vlgmr.msra.gmra.mrb[2].mxu0 %vm139_vm3, %v129_v14  ;;  %v421_v14 = vld [vmem:[%s1177_s9 + $0xb0] sm:$0xff] }
  0xec   :  { %688 = vmatprep.mubr.msk.f32.mxu0 %vm859_vm1, %v858_v2  ;;  %750 = vmatpush3.bf16.msra.mxu0 %v749_v17  ;;  %v420_v17 = vld [vmem:[%s1177_s9 + $0xa8] sm:$0xff] }
  0xed   :  { %751 = vmatprep.subr.bf16.mxu0 %v860_v6  ;;  %v780_v19 = vpack.c.bf16 %v420_v17, %v417_v16 }
  0xf0   :  { %753 = vmatpush3.bf16.msra.mxu0 %v752_v20  ;;  %v422_v20 = vld [vmem:[%s1177_s9 + $0xb8] sm:$0xff] }
  0xf1   :  { %767 = vmatprep.subr.bf16.mxu0 %v766_v44  ;;  %v438_v44 = vld [vmem:[%s1177_s9 + $0x138] sm:$0xff] }
 0x1be   :  { %v209_v22 = vpop.f32.mrb[2].mxu0 }
 0x1bf   :  { %v210_v23 = vadd.f32 %v626_v21, %v209_v22  ;;  %v679_v24 = vpop.f32.mrb[3].mxu0  ;;  %v808_v21 = vpack.c.bf16 %v422_v20, %v419_v18  ;;  %v424_v22 = vld [vmem:[%s1177_s9 + $0xc8] sm:$0xff] }
 0x1c1   :  { %v213_v25 = vmul.f32 0.5, %v210_v23  ;;  %v427_v23 = vld [vmem:[%s1177_s9 + $0xe0] sm:$0xff] }
 0x1c2   :  { %v782_v24 = vpack.c.bf16 %v427_v23, %v424_v22 }
 0x1c3   :  { %828 = vtanh.f32 %v213_v25  ;;  %v423_v25 = vld [vmem:[%s1177_s9 + $0xc0] sm:$0xff] }
 0x1cd   :  { %v829_v26 = vpop.eup %828 }
 0x1ce   :  { %v215_v27 = vmul.f32 0.5, %v829_v26  ;;  %v426_v26 = vld [vmem:[%s1177_s9 + $0xd8] sm:$0xff] }
 0x1d0   :  { %v216_v28 = vadd.f32 0.5, %v215_v27  ;;  %v425_v27 = vld [vmem:[%s1177_s9 + $0xd0] sm:$0xff] }
 0x1d1   :  { %v811_v30 = vpack.c.bf16 %v428_v29, %v425_v27 }
 0x1d2   :  { %689 = vmatmul.mubr.msk.f32.vlgmr.msra.gmra.mrb[4].mxu0 %vm228_vm4, %v216_v28  ;;  %v784_v28 = vpack.c.bf16 %v426_v26, %v423_v25 }
 0x1d3   :  { %528 = vmatprep.mubr.f32.mxu0 %v858_v2  ;;  %769 = vmatpush1.bf16.msra.mxu0 %v768_v46  ;;  %v792_v46 = vpack.c.bf16 %v438_v44, %v435_v43 }
 0x1d4   :  { %771 = vmatprep.subr.bf16.mxu0 %v770_v50  ;;  %v445_v50 = vld [vmem:[%s1177_s9 + $0x170] sm:$0xff] }
 0x1d5   :  { %v794_v51 = vpack.c.bf16 %v445_v50, %v442_v49 }
 0x1d7   :  { %773 = vmatpush1.bf16.msra.mxu0 %v772_v52  ;;  %v441_v52 = vld [vmem:[%s1177_s9 + $0x150] sm:$0xff] }
 0x1d8   :  { %775 = vmatprep.subr.bf16.mxu0 %v774_v55  ;;  %v796_v55 = vpack.c.bf16 %v444_v53, %v441_v52 }
 0x1db   :  { %777 = vmatpush1.bf16.msra.mxu0 %v776_v58  ;;  %v630_v58 = vld [vmem:[%s1176_s8] ss:$0 sm:$0xff]  ;;  %s861_s8 = smov [#allocation2]  }
 0x1dc   :  { %s615_s21 = sshll.u32 %s861_s8, 4  ;;  %s616_s21 = int_to_ptr.vmem [resolvable:$true] %s615_s21 }
 0x1dd   :  { %s834_s0 = scalar_lea.vmem %s616_s21, 384  ;;  %p839_p1 = scmp.lt.s32.totalorder %s616_s21, %s616_s21 }
 0x1de   :  { %p835_p0 = scmp.ne.s32.totalorder %s616_s21, %s834_s0  ;;  %p840_p2 = scmp.lt.s32.totalorder %s834_s0, %s834_s0 }
 0x1e0   :  { %p841_p3 = por %p840_p2, %p839_p1 }
 0x1e2   :  { %p842_p4 = pnand %p841_p3, %p835_p0 }
 0x2a5   :  { %v298_v60 = vpop.f32.mrb[4].mxu0 }
 0x2a6   :  { %v299_v61 = vadd.f32 %v628_v59, %v298_v60  ;;  %v690_v62 = vpop.f32.mrb[5].mxu0 }
 0x2a8   :  { %v302_v63 = vmul.f32 0.5, %v299_v61 }
 0x2aa   :  { %830 = vtanh.f32 %v302_v63 }
 0x2b4   :  { %v831_v3 = vpop.eup %830 }
 0x2b5   :  { %v304_v4 = vmul.f32 0.5, %v831_v3  ;;  %v450_v3 = vshrl.u32 %v449_v1, 7 }
 0x2b7   :  { %v305_v7 = vadd.f32 0.5, %v304_v4  ;;  %v451_v4 = vsub.s32 0, %v450_v3  ;;  %v455_v8 = vsub.s32 1, %v450_v3 }
 0x2b9   :  { %708 = vmatmul.mubr.msk.f32.vlgmr.msra.gmra.mrb[0].mxu1 %vm321_vm5, %v305_v7  ;;  %v447_v7 = vld [vmem:[%s1178_s10] sm:$0x7] }
 0x2ba   :  { %800 = vmatpush3.bf16.msra.mxu1 %v799_v5  ;;  %742 = vmatprep.mubr.msk.f32.mxu1 %vm859_vm1, %v858_v2  ;;  %v418_v2 = vld [vmem:[%s1177_s9 + $0x98] sm:$0xff]  ;;  %v459_v5 = vsub.s32 2, %v450_v3  ;;  %v452_v9 = vrot.slane %v447_v7, %v451_v4  ;;  %v456_v11 = vrot.slane %v447_v7, %v455_v8 }
 0x2bb   :  { %801 = vmatprep.subr.bf16.mxu1 %v860_v6  ;;  %v778_v15 = vpack.c.bf16 %v421_v14, %v418_v2 }
 0x2bd   :  { %779 = vmatprep.subr.bf16.mxu0 %v778_v15 }
 0x2be   :  { %803 = vmatpush3.bf16.msra.mxu1 %v802_v10  ;;  %781 = vmatpush1.bf16.msra.mxu0 %v780_v19  ;;  %v460_v10 = vrot.slane %v447_v7, %v459_v5 }
 0x2bf   :  { %804 = vmatprep.subr.bf16.mxu1 %v860_v6  ;;  %783 = vmatprep.subr.bf16.mxu0 %v782_v24 }
 0x2c2   :  { %806 = vmatpush3.bf16.msra.mxu1 %v805_v13  ;;  %785 = vmatpush1.bf16.msra.mxu0 %v784_v28 }
 0x2c3   :  { %807 = vmatprep.subr.bf16.mxu1 %v860_v6  ;;  %787 = vmatprep.subr.bf16.mxu0 %v786_v33 }
 0x2c6   :  { %809 = vmatpush3.bf16.msra.mxu1 %v808_v21  ;;  %789 = vmatpush1.bf16.msra.mxu0 %v788_v37 }
 0x2c7   :  { %810 = vmatprep.subr.bf16.mxu1 %v860_v6  ;;  %791 = vmatprep.subr.bf16.mxu0 %v790_v42 }
 0x2ca   :  { %812 = vmatpush3.bf16.msra.mxu1 %v811_v30  ;;  %793 = vmatpush1.bf16.msra.mxu0 %v792_v46 }
 0x2cb   :  { %813 = vmatprep.subr.bf16.mxu1 %v860_v6  ;;  %795 = vmatprep.subr.bf16.mxu0 %v794_v51 }
 0x2ce   :  { %815 = vmatpush3.bf16.msra.mxu1 %v814_v39  ;;  %797 = vmatpush1.bf16.msra.mxu0 %v796_v55 }
 0x2cf   :  { %816 = vmatprep.subr.bf16.mxu1 %v860_v6 }
 0x2d2   :  { %818 = vmatpush3.bf16.msra.mxu1 %v817_v48 }
 0x2d3   :  { %819 = vmatprep.subr.bf16.mxu1 %v860_v6 }
 0x2d6   :  { %821 = vmatpush3.bf16.msra.mxu1 %v820_v57 }
 0x38c   :  { %v391_v59 = vpop.f32.mrb[0].mxu1 }
 0x38d   :  { %v392_v60 = vadd.f32 %v630_v58, %v391_v59  ;;  %v709_v61 = vpop.f32.mrb[1].mxu1 }
 0x38f   :  { %v395_v62 = vmul.f32 0.5, %v392_v60 }
 0x391   :  { %832 = vtanh.f32 %v395_v62 }
 0x39b   :  { %v833_v63 = vpop.eup %832 }
 0x39c   :  { %v397_v6 = vmul.f32 0.5, %v833_v63 }
 0x39e   :  { %v398_v0 = vadd.f32 0.5, %v397_v6 }
 0x3a0   :  { %529 = vmatmul.mubr.f32.vlgmr.msra.gmra.mrb[6].mxu0 %v398_v0  ;;  %743 = vmatmul.mubr.f32.vlgmr.msra.gmra.mrb[2].mxu1 %v398_v0 }
 0x473   :  { %v530_v12 = vpop.f32.mrb[6].mxu0  ;;  %v601_v13 = vpop.f32.mrb[2].mxu1 }
 0x474   :  { %v531_v2 = vadd.f32 %v530_v12, %v452_v9  ;;  %v602_v14 = vadd.f32 %v601_v13, %v460_v10  ;;  %v532_v15 = vpop.f32.mrb[7].mxu0  ;;  %v744_v16 = vpop.f32.mrb[3].mxu1 }
 0x475   :  { %v533_v17 = vadd.f32 %v532_v15, %v456_v11 }
 0x476   :  { %605 = vst [vmem:[#allocation2] sm:$0xff] %v531_v2  ;;  %608 = vst.msk [vmem:[#allocation2 + $0x10] sm:$0xff] %vm607_vm6, %v602_v14 }
 0x477   :  { %606 = vst [vmem:[#allocation2 + $0x8] sm:$0xff] %v533_v17 }
 0x478   :  { %845 = shalt.err (!%p842_p4)
}
 0x479   :  { %s846_s23 = scalar_lea.hbm %s1179_s11, 384 }
 0x47a   :  { %p847_p5 = scmp.ne.s32.totalorder %s1179_s11, %s846_s23  ;;  %p850_p6 = scmp.lt.u32.totalorder %s846_s23, %s1179_s11 }
 0x47c   :  { %p852_p7 = pnand %p850_p6, %p847_p5 }
 0x47e   :  { %855 = shalt.err (!%p852_p7)
}
 0x47f   :  { %618 = dma.vmem_to_hbm [thread:$0]  %s616_s21, 384, %s1179_s11, [#allocation3]  }
 0x480   :  { %856 = dma.done.wait [#allocation3], 384  }
 0x481   :  { %857 = vsyncadd [#allocation3], 4294966912 }
 0x482   :  { %622 = vsyncpa [#allocation3], 1 }

</bundles_post_ra>
